<compile_context>
chip_gen: v7x
topology: tpu7x:2x2x1
jax: 0.10.0
libtpu: 0.0.40
codegen_flags: <defaults>
</compile_context>

<pallas_src>
import numpy as np
import jax
import jax.numpy as jnp
from jax.experimental import pallas as pl
from jax.experimental.pallas import tpu as pltpu


# ----------------------------- kernel ---------------------------------------

def mlp_kernel(x_ref, w1t_ref, b1_ref, w2t_ref, b2_ref, o_ref):
    # Layer 1: [TB, in] @ [in, hid] on the MXU, f32 accumulate, + bias.
    h = jnp.dot(x_ref[...], w1t_ref[...],
                preferred_element_type=jnp.float32) + b1_ref[...]
    # Exact sigmoid (EUP exp + exact divide) — matches torch.sigmoid.
    s = 1.0 / (1.0 + jnp.exp(-h))
    # Layer 2: [TB, hid] @ [hid, out_pad]; out columns are zero-padded to a
    # multiple of 128 so this store is lane-dense (unmasked vst).
    o_ref[...] = (jnp.dot(s, w2t_ref[...],
                          preferred_element_type=jnp.float32)
                  + b2_ref[...]).astype(o_ref.dtype)


# ----------------------------- helpers ---------------------------------------

def _round_up(x, m):
    return (x + m - 1) // m * m


def _cdiv(a, b):
    return -(-a // b)


def _tensorcores_per_chip():
    """v7x has 2 TensorCores per chip; v5e/v6e have 1."""
    try:
        kind = jax.devices()[0].device_kind.lower()
        if "v7" in kind:
            return 2
    except Exception:
        pass
    return 1


def _choose_batch_tiling(B, num_cores, max_tile_b=2048):
    """Pick (tile_b, num_tiles) for the batch grid.

    * multi-TC chips (v7x): balanced even >=2-way split so the "parallel"
      batch axis actually feeds both TensorCores.
    * single-TC chips (v5e/v6e): the grid is a sequential loop, so use one
      tile holding the whole (padded) batch; capped to bound VMEM for huge B.
    """
    if num_cores > 1:
        tile_b = _round_up(_cdiv(B, num_cores), 8)
    else:
        tile_b = _round_up(B, 8)
    tile_b = max(8, min(tile_b, max_tile_b))
    num_tiles = _cdiv(B, tile_b)
    if num_cores > 1:
        num_tiles = _round_up(num_tiles, num_cores)
    return tile_b, num_tiles


# ------------------------- one-time weight prep -------------------------------

def prepare_params(w1, b1, w2, b2, lane=128):
    """One-time prep: pre-transpose weights for the MXU's stored layout and
    zero-pad the output columns to a lane-dense multiple of 128.
    Call once per model (or let it constant-fold under jit)."""
    units_dim, _input_dim = w1.shape
    output_dim = w2.shape[0]
    out_pad = _round_up(output_dim, lane)

    w1t = jnp.asarray(w1, jnp.float32).T                        # [in, hid]
    b1r = jnp.asarray(b1, jnp.float32).reshape(1, units_dim)    # [1, hid]
    w2t = jnp.zeros((units_dim, out_pad), jnp.float32)
    w2t = w2t.at[:, :output_dim].set(jnp.asarray(w2, jnp.float32).T)
    b2r = jnp.zeros((1, out_pad), jnp.float32)
    b2r = b2r.at[:, :output_dim].set(jnp.asarray(b2, jnp.float32).reshape(1, -1))

    return {"w1t": w1t, "b1": b1r, "w2t": w2t, "b2": b2r,
            "output_dim": output_dim}


# ------------------------------ forward ---------------------------------------

def model_mnist_forward(x, params):
    """x: [B, input_dim] f32; params from prepare_params()."""
    w1t, b1_2d = params["w1t"], params["b1"]
    w2t, b2_2d = params["w2t"], params["b2"]
    output_dim = params["output_dim"]

    x = jnp.asarray(x, jnp.float32)
    B, input_dim = x.shape
    units_dim = w1t.shape[1]
    out_pad = w2t.shape[1]

    num_cores = _tensorcores_per_chip()
    tile_b, num_tiles = _choose_batch_tiling(B, num_cores)
    b_pad = tile_b * num_tiles
    if b_pad != B:
        # Ragged tail only; padded rows are sliced off below.
        x = jnp.pad(x, ((0, b_pad - B), (0, 0)))

    flops = (2 * b_pad * input_dim * units_dim
             + 2 * b_pad * units_dim * out_pad
             + 5 * b_pad * units_dim)           # bias + sigmoid elementwise
    bytes_accessed = 4 * (b_pad * input_dim + w1t.size + b1_2d.size
                          + w2t.size + b2_2d.size + b_pad * out_pad)

    out = pl.pallas_call(
        mlp_kernel,
        out_shape=jax.ShapeDtypeStruct((b_pad, out_pad), jnp.float32),
        grid=(num_tiles,),
        in_specs=[
            # Activations: tiled along the batch axis.
            pl.BlockSpec((tile_b, input_dim), lambda i: (i, 0)),
            # Weights / biases: constant index_map -> resident in VMEM.
            pl.BlockSpec((input_dim, units_dim), lambda i: (0, 0)),
            pl.BlockSpec((1, units_dim), lambda i: (0, 0)),
            pl.BlockSpec((units_dim, out_pad), lambda i: (0, 0)),
            pl.BlockSpec((1, out_pad), lambda i: (0, 0)),
        ],
        out_specs=pl.BlockSpec((tile_b, out_pad), lambda i: (i, 0)),
        compiler_params=pltpu.CompilerParams(
            dimension_semantics=("parallel",)),
        cost_estimate=pl.CostEstimate(
            flops=flops,
            transcendentals=b_pad * units_dim,      # one exp per hidden unit
            bytes_accessed=bytes_accessed),
    )(x, w1t, b1_2d, w2t, b2_2d)

    # Drop batch padding and the zero-padded output columns.
    return out[:B, :output_dim]


# ------------------------------- test -----------------------------------------

def reference_forward_np(x, w1, b1, w2, b2):
    """Exact float64 NumPy equivalent of the PyTorch module's forward."""
    x = np.asarray(x, np.float64)
    w1 = np.asarray(w1, np.float64)
    b1 = np.asarray(b1, np.float64)
    w2 = np.asarray(w2, np.float64)
    b2 = np.asarray(b2, np.float64)
    h = x @ w1.T + b1
    s = 1.0 / (1.0 + np.exp(-h))
    return s @ w2.T + b2


if __name__ == "__main__":
    # MNIST-style MLP at small shapes: input_dim=64, units_dim=32, output_dim=16.
    batch, input_dim, units_dim, output_dim = 256, 64, 32, 16

    # Deterministic parameter init, matching the PyTorch module's scheme
    # (np.random.seed(0), standard-normal weights, zero biases).
    np.random.seed(0)
    w1 = jnp.asarray(np.random.standard_normal((units_dim, input_dim)),
                     dtype=jnp.float32)
    w2 = jnp.asarray(np.random.standard_normal((output_dim, units_dim)),
                     dtype=jnp.float32)
    b1 = jnp.zeros((units_dim,), dtype=jnp.float32)
    b2 = jnp.zeros((output_dim,), dtype=jnp.float32)

    # Deterministic input.
    x = jax.random.normal(jax.random.PRNGKey(0), (batch, input_dim),
                          dtype=jnp.float32)

    params = prepare_params(w1, b1, w2, b2)      # one-time weight prep
    out = jax.block_until_ready(model_mnist_forward(x, params))
    assert out.shape == (batch, output_dim), out.shape

    # f32 kernel vs. float64 NumPy reference (same exact-sigmoid math path;
    # only f32 rounding / MXU accumulation order differ).
    ref = reference_forward_np(x, w1, b1, w2, b2).astype(np.float32)
    np.testing.assert_allclose(np.asarray(out), ref, rtol=1e-3, atol=1e-3)

    print("KERNEL_OK")
</pallas_src>

<mosaic_0001>
module attributes {stable_mosaic.version = 11 : i64} {
  func.func @mlp_kernel(%arg0: i32, %arg1: memref<256x64xf32, #tpu.memory_space<vmem>>, %arg2: memref<64x32xf32, #tpu.memory_space<vmem>>, %arg3: memref<1x32xf32, #tpu.memory_space<vmem>>, %arg4: memref<32x128xf32, #tpu.memory_space<vmem>>, %arg5: memref<1x128xf32, #tpu.memory_space<vmem>>, %arg6: memref<256x128xf32, #tpu.memory_space<vmem>>) attributes {dimension_semantics = [#tpu.dimension_semantics<parallel>], iteration_bounds = array<i64: 1>, scalar_prefetch = 0 : i64, scratch_operands = 0 : i64, tpu.core_type = #tpu.core_type<tc>, window_params = [{transform_indices = @transform_0, window_bounds = array<i64: 256, 64>}, {pipeline_mode = #tpu.pipeline_mode<synchronous>, transform_indices = @transform_1, window_bounds = array<i64: 64, 32>}, {pipeline_mode = #tpu.pipeline_mode<synchronous>, transform_indices = @transform_2, window_bounds = array<i64: 1, 32>}, {pipeline_mode = #tpu.pipeline_mode<synchronous>, transform_indices = @transform_3, window_bounds = array<i64: 32, 128>}, {pipeline_mode = #tpu.pipeline_mode<synchronous>, transform_indices = @transform_4, window_bounds = array<i64: 1, 128>}, {transform_indices = @transform_5, window_bounds = array<i64: 256, 128>}]} {
    %c0 = arith.constant 0 : index
    %c0_0 = arith.constant 0 : index
    %0 = vector.load %arg1[%c0, %c0_0] : memref<256x64xf32, #tpu.memory_space<vmem>>, vector<256x64xf32>
    %c0_1 = arith.constant 0 : index
    %c0_2 = arith.constant 0 : index
    %1 = vector.load %arg2[%c0_1, %c0_2] : memref<64x32xf32, #tpu.memory_space<vmem>>, vector<64x32xf32>
    %cst = arith.constant dense<0.000000e+00> : vector<256x32xf32>
    %2 = tpu.matmul %0, %1, %cst {dimension_numbers = #tpu.dot_dimension_numbers<[1], [0], [0], [1], [0, 0, 1, 1], [], []>} : vector<256x64xf32>, vector<64x32xf32>, vector<256x32xf32> -> vector<256x32xf32>
    %c0_3 = arith.constant 0 : index
    %c0_4 = arith.constant 0 : index
    %3 = vector.load %arg3[%c0_3, %c0_4] : memref<1x32xf32, #tpu.memory_space<vmem>>, vector<1x32xf32>
    %4 = vector.broadcast %3 : vector<1x32xf32> to vector<256x32xf32>
    %5 = arith.addf %2, %4 : vector<256x32xf32>
    %cst_5 = arith.constant 0.000000e+00 : f32
    %6 = vector.broadcast %cst_5 : f32 to vector<256x32xf32>
    %7 = arith.subf %6, %5 : vector<256x32xf32>
    %8 = math.exp %7 : vector<256x32xf32>
    %cst_6 = arith.constant 1.000000e+00 : f32
    %9 = vector.broadcast %cst_6 : f32 to vector<256x32xf32>
    %10 = arith.addf %9, %8 : vector<256x32xf32>
    %cst_7 = arith.constant 1.000000e+00 : f32
    %11 = vector.broadcast %cst_7 : f32 to vector<256x32xf32>
    %12 = arith.divf %11, %10 : vector<256x32xf32>
    %c0_8 = arith.constant 0 : index
    %c0_9 = arith.constant 0 : index
    %13 = vector.load %arg4[%c0_8, %c0_9] : memref<32x128xf32, #tpu.memory_space<vmem>>, vector<32x128xf32>
    %cst_10 = arith.constant dense<0.000000e+00> : vector<256x128xf32>
    %14 = tpu.matmul %12, %13, %cst_10 {dimension_numbers = #tpu.dot_dimension_numbers<[1], [0], [0], [1], [0, 0, 1, 1], [], []>} : vector<256x32xf32>, vector<32x128xf32>, vector<256x128xf32> -> vector<256x128xf32>
    %c0_11 = arith.constant 0 : index
    %c0_12 = arith.constant 0 : index
    %15 = vector.load %arg5[%c0_11, %c0_12] : memref<1x128xf32, #tpu.memory_space<vmem>>, vector<1x128xf32>
    %16 = vector.broadcast %15 : vector<1x128xf32> to vector<256x128xf32>
    %17 = arith.addf %14, %16 : vector<256x128xf32>
    %c0_13 = arith.constant 0 : index
    %c0_14 = arith.constant 0 : index
    %18 = vector.load %arg6[%c0_13, %c0_14] : memref<256x128xf32, #tpu.memory_space<vmem>>, vector<256x128xf32>
    tpu.vector_store %arg6[%c0_13, %c0_14], %17 {strides = array<i32>} : memref<256x128xf32, #tpu.memory_space<vmem>>, vector<256x128xf32>,
    return
  }
  func.func @transform_0(%arg0: i32) -> (i32, i32) {
    %c0_i32 = arith.constant 0 : i32
    %c0_i32_0 = arith.constant 0 : i32
    return %arg0, %c0_i32 : i32, i32
  }
  func.func @transform_1(%arg0: i32) -> (i32, i32) {
    %c0_i32 = arith.constant 0 : i32
    %c0_i32_0 = arith.constant 0 : i32
    %c0_i32_1 = arith.constant 0 : i32
    return %c0_i32, %c0_i32_0 : i32, i32
  }
  func.func @transform_2(%arg0: i32) -> (i32, i32) {
    %c0_i32 = arith.constant 0 : i32
    %c0_i32_0 = arith.constant 0 : i32
    %c0_i32_1 = arith.constant 0 : i32
    return %c0_i32, %c0_i32_0 : i32, i32
  }
  func.func @transform_3(%arg0: i32) -> (i32, i32) {
    %c0_i32 = arith.constant 0 : i32
    %c0_i32_0 = arith.constant 0 : i32
    %c0_i32_1 = arith.constant 0 : i32
    return %c0_i32, %c0_i32_0 : i32, i32
  }
  func.func @transform_4(%arg0: i32) -> (i32, i32) {
    %c0_i32 = arith.constant 0 : i32
    %c0_i32_0 = arith.constant 0 : i32
    %c0_i32_1 = arith.constant 0 : i32
    return %c0_i32, %c0_i32_0 : i32, i32
  }
  func.func @transform_5(%arg0: i32) -> (i32, i32) {
    %c0_i32 = arith.constant 0 : i32
    %c0_i32_0 = arith.constant 0 : i32
    return %arg0, %c0_i32 : i32, i32
  }
}

</mosaic_0001>

<bundles_post_ra>
// kernel: tpu_custom_call.1
= control target key start
LH: loop header
LB: loop body
LE: loop exit
PB: predicated region body
PF: predicated region fallthrough
CT: control target
= control target key end

     0   :  { %vm68_vm0 = vcmask 523264   ;;  %s1719_s0 = inlined_call_operand.vmem [shape: f32[256,64], index: 0, kind: input, shape index: {}]   ;;  %s1720_s1 = inlined_call_operand.vmem [shape: f32[64,32], index: 1, kind: input, shape index: {}]   ;;  %s1721_s2 = inlined_call_operand.vmem [shape: f32[1,32], index: 2, kind: input, shape index: {}]   ;;  %s1722_s3 = inlined_call_operand.vmem [shape: f32[32,128], index: 3, kind: input, shape index: {}]   ;;  %s1723_s4 = inlined_call_operand.vmem [shape: f32[1,128], index: 4, kind: input, shape index: {}]   ;;  %s1724_s5 = inlined_call_operand.hbm [shape: f32[256,128], index: 5, kind: output, shape index: {}]  }
   0x1   :  { %v53_v0 = vld [vmem:[%s1720_s1] sm:$0xff]  ;;  %v54_v1 = vld [vmem:[%s1720_s1 + $0x8] sm:$0xff]  ;;  %v55_v2 = vld [vmem:[%s1720_s1 + $0x10] sm:$0xff] }
   0x2   :  { %v1225_v3 = vpack.c.bf16 %v54_v1, %v53_v0  ;;  %v56_v4 = vld [vmem:[%s1720_s1 + $0x18] sm:$0xff]  ;;  %v57_v6 = vld [vmem:[%s1720_s1 + $0x20] sm:$0xff]  ;;  %v58_v7 = vld [vmem:[%s1720_s1 + $0x28] sm:$0xff] }
   0x3   :  { %v1229_v5 = vpack.c.bf16 %v56_v4, %v55_v2  ;;  %v21_v8 = vld [vmem:[%s1719_s0] sm:$0xff]  ;;  %v1233_v9 = vpack.c.bf16 %v58_v7, %v57_v6  ;;  %v59_v10 = vld [vmem:[%s1720_s1 + $0x30] sm:$0xff]  ;;  %v60_v11 = vld [vmem:[%s1720_s1 + $0x38] sm:$0xff] }
   0x4   :  { %1226 = vmatprep.subr.bf16.mxu0 %v1225_v3  ;;  %1121 = vmatprep.mubr.msk.f32.mxu0 %vm68_vm0, %v21_v8  ;;  %v1237_v12 = vpack.c.bf16 %v60_v11, %v59_v10 }
   0x5   :  { %1228 = vmatpush3.bf16.msra.mxu0 %v1225_v3 }
   0x6   :  { %1230 = vmatprep.subr.bf16.mxu0 %v1229_v5 }
   0x9   :  { %1232 = vmatpush3.bf16.msra.mxu0 %v1229_v5 }
   0xa   :  { %1234 = vmatprep.subr.bf16.mxu0 %v1233_v9 }
   0xd   :  { %1236 = vmatpush3.bf16.msra.mxu0 %v1233_v9 }
   0xe   :  { %1238 = vmatprep.subr.bf16.mxu0 %v1237_v12 }
   0xf   :  { %10 = vsyncpa [#allocation3], 0  ;;  %v22_v13 = vld [vmem:[%s1719_s0 + $0x8] sm:$0xff]  ;;  %v23_v14 = vld [vmem:[%s1719_s0 + $0x10] sm:$0xff]  ;;  %vm593_vm1 = vcmask 261120  }
  0x10   :  { %v24_v15 = vld [vmem:[%s1719_s0 + $0x18] sm:$0xff]  ;;  %v25_v16 = vld [vmem:[%s1719_s0 + $0x20] sm:$0xff]  ;;  %v26_v17 = vld [vmem:[%s1719_s0 + $0x28] sm:$0xff] }
  0x11   :  { %1240 = vmatpush3.bf16.msra.mxu0 %v1237_v12  ;;  %v27_v18 = vld [vmem:[%s1719_s0 + $0x30] sm:$0xff]  ;;  %v28_v19 = vld [vmem:[%s1719_s0 + $0x38] sm:$0xff]  ;;  %v29_v20 = vld [vmem:[%s1719_s0 + $0x40] sm:$0xff] }
  0x12   :  { %v30_v21 = vld [vmem:[%s1719_s0 + $0x48] sm:$0xff]  ;;  %v31_v22 = vld [vmem:[%s1719_s0 + $0x50] sm:$0xff]  ;;  %v32_v23 = vld [vmem:[%s1719_s0 + $0x58] sm:$0xff] }
  0x13   :  { %v33_v24 = vld [vmem:[%s1719_s0 + $0x60] sm:$0xff]  ;;  %v34_v25 = vld [vmem:[%s1719_s0 + $0x68] sm:$0xff]  ;;  %v35_v26 = vld [vmem:[%s1719_s0 + $0x70] sm:$0xff] }
  0x14   :  { %1122 = vmatmul.mubr.msk.f32.vlgmr.msra.gmra.mrb[0].mxu0 %vm68_vm0, %v22_v13  ;;  %v36_v27 = vld [vmem:[%s1719_s0 + $0x78] sm:$0xff]  ;;  %v37_v28 = vld [vmem:[%s1719_s0 + $0x80] sm:$0xff]  ;;  %v38_v29 = vld [vmem:[%s1719_s0 + $0x88] sm:$0xff] }
  0x15   :  { %1124 = vmatprep.mubr.msk.f32.mxu0 %vm68_vm0, %v23_v14  ;;  %v39_v30 = vld [vmem:[%s1719_s0 + $0x90] sm:$0xff]  ;;  %v40_v31 = vld [vmem:[%s1719_s0 + $0x98] sm:$0xff]  ;;  %v41_v32 = vld [vmem:[%s1719_s0 + $0xa0] sm:$0xff] }
  0x16   :  { %v42_v33 = vld [vmem:[%s1719_s0 + $0xa8] sm:$0xff]  ;;  %v43_v34 = vld [vmem:[%s1719_s0 + $0xb0] sm:$0xff]  ;;  %v44_v35 = vld [vmem:[%s1719_s0 + $0xb8] sm:$0xff] }
  0x17   :  { %v45_v36 = vld [vmem:[%s1719_s0 + $0xc0] sm:$0xff]  ;;  %v46_v37 = vld [vmem:[%s1719_s0 + $0xc8] sm:$0xff]  ;;  %v47_v38 = vld [vmem:[%s1719_s0 + $0xd0] sm:$0xff] }
  0x18   :  { %1125 = vmatmul.mubr.msk.f32.gmra.mrb[2].mxu0 %vm68_vm0, %v24_v15  ;;  %v48_v39 = vld [vmem:[%s1719_s0 + $0xd8] sm:$0xff]  ;;  %v49_v40 = vld [vmem:[%s1719_s0 + $0xe0] sm:$0xff]  ;;  %v50_v41 = vld [vmem:[%s1719_s0 + $0xe8] sm:$0xff] }
  0x19   :  { %1127 = vmatprep.mubr.msk.f32.mxu0 %vm68_vm0, %v25_v16  ;;  %v51_v42 = vld [vmem:[%s1719_s0 + $0xf0] sm:$0xff]  ;;  %v52_v43 = vld [vmem:[%s1719_s0 + $0xf8] sm:$0xff]  ;;  %v582_v44 = vld [vmem:[%s1722_s3] sm:$0xff] }
  0x1a   :  { %v583_v45 = vld [vmem:[%s1722_s3 + $0x8] sm:$0xff]  ;;  %v584_v47 = vld [vmem:[%s1722_s3 + $0x10] sm:$0xff]  ;;  %v585_v48 = vld [vmem:[%s1722_s3 + $0x18] sm:$0xff] }
  0x1b   :  { %v1241_v46 = vpack.c.bf16 %v583_v45, %v582_v44  ;;  %v1245_v49 = vpack.c.bf16 %v585_v48, %v584_v47  ;;  %v1604_v50 = vld [vmem:[%s1721_s2] ss:$0 sm:$0xff] }
  0x1c   :  { %1128 = vmatmul.mubr.msk.f32.gmra.mrb[4].mxu0 %vm68_vm0, %v26_v17 }
  0x1d   :  { %1130 = vmatprep.mubr.msk.f32.mxu0 %vm68_vm0, %v27_v18  ;;  %1242 = vmatprep.subr.bf16.mxu1 %v1241_v46 }
  0x1e   :  { %1244 = vmatpush3.bf16.msra.mxu1 %v1241_v46 }
  0x1f   :  { %1246 = vmatprep.subr.bf16.mxu1 %v1245_v49 }
  0x20   :  { %1131 = vmatmul.mubr.msk.f32.gmra.mrb[6].mxu0 %vm68_vm0, %v28_v19 }
  0x21   :  { %1133 = vmatprep.mubr.msk.f32.mxu0 %vm68_vm0, %v29_v20 }
  0x22   :  { %1248 = vmatpush3.bf16.msra.mxu1 %v1245_v49 }
  0x24   :  { %1134 = vmatmul.mubr.msk.f32.gmra.mrb[8].mxu0 %vm68_vm0, %v30_v21 }
  0x25   :  { %1136 = vmatprep.mubr.msk.f32.mxu0 %vm68_vm0, %v31_v22 }
  0x28   :  { %1137 = vmatmul.mubr.msk.f32.gmra.mrb[10].mxu0 %vm68_vm0, %v32_v23 }
  0x29   :  { %1139 = vmatprep.mubr.msk.f32.mxu0 %vm68_vm0, %v33_v24 }
  0x2c   :  { %1140 = vmatmul.mubr.msk.f32.gmra.mrb[12].mxu0 %vm68_vm0, %v34_v25 }
  0x2d   :  { %1142 = vmatprep.mubr.msk.f32.mxu0 %vm68_vm0, %v35_v26 }
  0x30   :  { %1143 = vmatmul.mubr.msk.f32.gmra.mrb[14].mxu0 %vm68_vm0, %v36_v27 }
  0x31   :  { %1145 = vmatprep.mubr.msk.f32.mxu0 %vm68_vm0, %v37_v28 }
  0x34   :  { %1146 = vmatmul.mubr.msk.f32.gmra.mrb[16].mxu0 %vm68_vm0, %v38_v29 }
  0x35   :  { %1148 = vmatprep.mubr.msk.f32.mxu0 %vm68_vm0, %v39_v30 }
  0x38   :  { %1149 = vmatmul.mubr.msk.f32.gmra.mrb[18].mxu0 %vm68_vm0, %v40_v31 }
  0x39   :  { %1151 = vmatprep.mubr.msk.f32.mxu0 %vm68_vm0, %v41_v32 }
  0x3c   :  { %1152 = vmatmul.mubr.msk.f32.gmra.mrb[20].mxu0 %vm68_vm0, %v42_v33 }
  0x3d   :  { %1154 = vmatprep.mubr.msk.f32.mxu0 %vm68_vm0, %v43_v34 }
  0x40   :  { %1155 = vmatmul.mubr.msk.f32.gmra.mrb[22].mxu0 %vm68_vm0, %v44_v35 }
  0x41   :  { %1157 = vmatprep.mubr.msk.f32.mxu0 %vm68_vm0, %v45_v36 }
  0x44   :  { %1158 = vmatmul.mubr.msk.f32.gmra.mrb[24].mxu0 %vm68_vm0, %v46_v37 }
  0x45   :  { %1160 = vmatprep.mubr.msk.f32.mxu0 %vm68_vm0, %v47_v38 }
  0x48   :  { %1161 = vmatmul.mubr.msk.f32.gmra.mrb[26].mxu0 %vm68_vm0, %v48_v39 }
  0x49   :  { %1163 = vmatprep.mubr.msk.f32.mxu0 %vm68_vm0, %v49_v40 }
  0x4c   :  { %1164 = vmatmul.mubr.msk.f32.gmra.mrb[28].mxu0 %vm68_vm0, %v50_v41 }
  0x4d   :  { %1166 = vmatprep.mubr.msk.f32.mxu0 %vm68_vm0, %v51_v42 }
  0x50   :  { %1167 = vmatmul.mubr.msk.f32.gmra.mrb[30].mxu0 %vm68_vm0, %v52_v43 }
  0xe7   :  { %v1123_v51 = vpop.f32.mrb[0].mxu0 }
  0xe8   :  { %v237_v52 = vadd.f32 %v1123_v51, %v1604_v50  ;;  %v231_v53 = vpop.f32.mrb[1].mxu0 }
  0xe9   :  { %v232_v54 = vadd.f32 %v1604_v50, %v231_v53 }
  0xea   :  { %v391_v55 = vsub.f32 0.0, %v237_v52 }
  0xeb   :  { %v390_v56 = vsub.f32 0.0, %v232_v54  ;;  %v1126_v57 = vpop.f32.mrb[2].mxu0 }
  0xec   :  { %v424_v58 = vmul.f32 1.442695, %v391_v55  ;;  %v247_v59 = vadd.f32 %v1126_v57, %v1604_v50  ;;  %v241_v60 = vpop.f32.mrb[3].mxu0 }
  0xed   :  { %v422_v61 = vmul.f32 1.442695, %v390_v56  ;;  %v242_v62 = vadd.f32 %v1604_v50, %v241_v60 }
  0xee   :  { %1252 = vpow2.f32 %v424_v58  ;;  %v393_v63 = vsub.f32 0.0, %v247_v59 }
  0xef   :  { %1254 = vpow2.f32 %v422_v61  ;;  %v392_v0 = vsub.f32 0.0, %v242_v62  ;;  %v1129_v1 = vpop.f32.mrb[4].mxu0 }
  0xf0   :  { %v428_v2 = vmul.f32 1.442695, %v393_v63  ;;  %v257_v3 = vadd.f32 %v1129_v1, %v1604_v50  ;;  %v251_v4 = vpop.f32.mrb[5].mxu0 }
  0xf1   :  { %v426_v5 = vmul.f32 1.442695, %v392_v0  ;;  %v252_v6 = vadd.f32 %v1604_v50, %v251_v4 }
  0xf2   :  { %1256 = vpow2.f32 %v428_v2  ;;  %v395_v7 = vsub.f32 0.0, %v257_v3 }
  0xf3   :  { %1258 = vpow2.f32 %v426_v5  ;;  %v394_v8 = vsub.f32 0.0, %v252_v6  ;;  %v1132_v9 = vpop.f32.mrb[6].mxu0 }
  0xf4   :  { %v432_v10 = vmul.f32 1.442695, %v395_v7  ;;  %v267_v11 = vadd.f32 %v1132_v9, %v1604_v50  ;;  %v261_v12 = vpop.f32.mrb[7].mxu0 }
  0xf5   :  { %v430_v13 = vmul.f32 1.442695, %v394_v8  ;;  %v262_v14 = vadd.f32 %v1604_v50, %v261_v12 }
  0xf6   :  { %1260 = vpow2.f32 %v432_v10  ;;  %v397_v15 = vsub.f32 0.0, %v267_v11 }
  0xf7   :  { %1262 = vpow2.f32 %v430_v13  ;;  %v396_v16 = vsub.f32 0.0, %v262_v14  ;;  %v1135_v17 = vpop.f32.mrb[8].mxu0 }
  0xf8   :  { %v1253_v18 = vpop.eup %1252  ;;  %v436_v19 = vmul.f32 1.442695, %v397_v15  ;;  %v277_v20 = vadd.f32 %v1135_v17, %v1604_v50  ;;  %v271_v21 = vpop.f32.mrb[9].mxu0 }
  0xf9   :  { %v1255_v22 = vpop.eup %1254  ;;  %v487_v23 = vadd.f32 1.0, %v1253_v18  ;;  %v434_v24 = vmul.f32 1.442695, %v396_v16  ;;  %v272_v25 = vadd.f32 %v1604_v50, %v271_v21 }
  0xfa   :  { %v486_v26 = vadd.f32 1.0, %v1255_v22  ;;  %1264 = vpow2.f32 %v436_v19  ;;  %v399_v27 = vsub.f32 0.0, %v277_v20 }
  0xfb   :  { %1266 = vrcp.f32 %v487_v23  ;;  %v398_v28 = vsub.f32 0.0, %v272_v25  ;;  %v1138_v29 = vpop.f32.mrb[10].mxu0 }
  0xfc   :  { %v1257_v30 = vpop.eup %1256  ;;  %1268 = vrcp.f32 %v486_v26  ;;  %v440_v31 = vmul.f32 1.442695, %v399_v27  ;;  %v287_v32 = vadd.f32 %v1138_v29, %v1604_v50  ;;  %v281_v33 = vpop.f32.mrb[11].mxu0 }
  0xfd   :  { %v1259_v34 = vpop.eup %1258  ;;  %v489_v35 = vadd.f32 1.0, %v1257_v30  ;;  %1270 = vpow2.f32 %v434_v24  ;;  %v438_v36 = vmul.f32 1.442695, %v398_v28  ;;  %v282_v37 = vadd.f32 %v1604_v50, %v281_v33 }
  0xfe   :  { %v488_v38 = vadd.f32 1.0, %v1259_v34  ;;  %1272 = vpow2.f32 %v440_v31  ;;  %v401_v39 = vsub.f32 0.0, %v287_v32 }
  0xff   :  { %1274 = vrcp.f32 %v489_v35  ;;  %v400_v40 = vsub.f32 0.0, %v282_v37  ;;  %v1141_v41 = vpop.f32.mrb[12].mxu0 }
 0x100   :  { %v1261_v42 = vpop.eup %1260  ;;  %1276 = vrcp.f32 %v488_v38  ;;  %v444_v43 = vmul.f32 1.442695, %v401_v39  ;;  %v297_v44 = vadd.f32 %v1141_v41, %v1604_v50  ;;  %v291_v45 = vpop.f32.mrb[13].mxu0 }
 0x101   :  { %v1263_v46 = vpop.eup %1262  ;;  %v491_v47 = vadd.f32 1.0, %v1261_v42  ;;  %1278 = vpow2.f32 %v438_v36  ;;  %v442_v48 = vmul.f32 1.442695, %v400_v40  ;;  %v292_v49 = vadd.f32 %v1604_v50, %v291_v45 }
 0x102   :  { %v490_v51 = vadd.f32 1.0, %v1263_v46  ;;  %1280 = vpow2.f32 %v444_v43  ;;  %v403_v52 = vsub.f32 0.0, %v297_v44 }
 0x103   :  { %1282 = vrcp.f32 %v491_v47  ;;  %v402_v53 = vsub.f32 0.0, %v292_v49  ;;  %v1144_v54 = vpop.f32.mrb[14].mxu0 }
 0x104   :  { %v1265_v55 = vpop.eup %1264  ;;  %1284 = vrcp.f32 %v490_v51  ;;  %v448_v56 = vmul.f32 1.442695, %v403_v52  ;;  %v307_v57 = vadd.f32 %v1144_v54, %v1604_v50  ;;  %v301_v58 = vpop.f32.mrb[15].mxu0 }
 0x105   :  { %v1267_v59 = vpop.eup %1266  ;;  %v493_v60 = vadd.f32 1.0, %v1265_v55  ;;  %1286 = vpow2.f32 %v442_v48  ;;  %v446_v61 = vmul.f32 1.442695, %v402_v53  ;;  %v302_v62 = vadd.f32 %v1604_v50, %v301_v58 }
 0x106   :  { %v1269_v63 = vpop.eup %1268  ;;  %1288 = vpow2.f32 %v448_v56  ;;  %v405_v0 = vsub.f32 0.0, %v307_v57 }
 0x107   :  { %v1271_v1 = vpop.eup %1270  ;;  %v404_v2 = vsub.f32 0.0, %v302_v62  ;;  %v1147_v3 = vpop.f32.mrb[16].mxu0  ;;  %1177 = vmatprep.mubr.msk.f32.mxu1 %vm593_vm1, %v1269_v63  ;;  %1290 = vpow2.f32 %v446_v61 }
 0x108   :  { %v1273_v4 = vpop.eup %1272  ;;  %v492_v5 = vadd.f32 1.0, %v1271_v1  ;;  %v452_v6 = vmul.f32 1.442695, %v405_v0  ;;  %v317_v7 = vadd.f32 %v1147_v3, %v1604_v50  ;;  %v311_v8 = vpop.f32.mrb[17].mxu0  ;;  %1178 = vmatmul.mubr.msk.f32.vlgmr.msra.gmra.mrb[0].mxu1 %vm593_vm1, %v1267_v59  ;;  %1292 = vrcp.f32 %v493_v60 }
 0x109   :  { %v1275_v9 = vpop.eup %1274  ;;  %v495_v10 = vadd.f32 1.0, %v1273_v4  ;;  %v450_v11 = vmul.f32 1.442695, %v404_v2  ;;  %v312_v12 = vadd.f32 %v1604_v50, %v311_v8 }
 0x10a   :  { %v1277_v13 = vpop.eup %1276  ;;  %1294 = vrcp.f32 %v492_v5  ;;  %v407_v14 = vsub.f32 0.0, %v317_v7 }
 0x10b   :  { %v1279_v15 = vpop.eup %1278  ;;  %1296 = vrcp.f32 %v495_v10  ;;  %v406_v16 = vsub.f32 0.0, %v312_v12  ;;  %v1150_v17 = vpop.f32.mrb[18].mxu0  ;;  %1180 = vmatprep.mubr.msk.f32.mxu1 %vm593_vm1, %v1277_v13 }
 0x10c   :  { %v1281_v18 = vpop.eup %1280  ;;  %v494_v19 = vadd.f32 1.0, %v1279_v15  ;;  %1298 = vpow2.f32 %v452_v6  ;;  %v456_v20 = vmul.f32 1.442695, %v407_v14  ;;  %v327_v21 = vadd.f32 %v1150_v17, %v1604_v50  ;;  %v321_v22 = vpop.f32.mrb[19].mxu0  ;;  %1181 = vmatmul.mubr.msk.f32.gmra.mrb[2].mxu1 %vm593_vm1, %v1275_v9 }
 0x10d   :  { %v1283_v23 = vpop.eup %1282  ;;  %v497_v24 = vadd.f32 1.0, %v1281_v18  ;;  %1300 = vpow2.f32 %v450_v11  ;;  %v454_v25 = vmul.f32 1.442695, %v406_v16  ;;  %v322_v26 = vadd.f32 %v1604_v50, %v321_v22 }
 0x10e   :  { %v1285_v27 = vpop.eup %1284  ;;  %1302 = vrcp.f32 %v494_v19  ;;  %v409_v28 = vsub.f32 0.0, %v327_v21 }
 0x10f   :  { %v1287_v29 = vpop.eup %1286  ;;  %1304 = vrcp.f32 %v497_v24  ;;  %v408_v30 = vsub.f32 0.0, %v322_v26  ;;  %v1153_v31 = vpop.f32.mrb[20].mxu0  ;;  %1183 = vmatprep.mubr.msk.f32.mxu1 %vm593_vm1, %v1285_v27 }
 0x110   :  { %v1289_v32 = vpop.eup %1288  ;;  %v496_v33 = vadd.f32 1.0, %v1287_v29  ;;  %1306 = vpow2.f32 %v456_v20  ;;  %v460_v34 = vmul.f32 1.442695, %v409_v28  ;;  %v337_v35 = vadd.f32 %v1153_v31, %v1604_v50  ;;  %v331_v36 = vpop.f32.mrb[21].mxu0  ;;  %1184 = vmatmul.mubr.msk.f32.gmra.mrb[4].mxu1 %vm593_vm1, %v1283_v23 }
 0x111   :  { %v499_v37 = vadd.f32 1.0, %v1289_v32  ;;  %1308 = vpow2.f32 %v454_v25  ;;  %v332_v38 = vadd.f32 %v1604_v50, %v331_v36  ;;  %v1291_v39 = vpop.eup %1290  ;;  %v458_v40 = vmul.f32 1.442695, %v408_v30 }
 0x112   :  { %1310 = vrcp.f32 %v496_v33  ;;  %v411_v41 = vsub.f32 0.0, %v337_v35  ;;  %v1293_v42 = vpop.eup %1292  ;;  %v498_v43 = vadd.f32 1.0, %v1291_v39 }
 0x113   :  { %1312 = vrcp.f32 %v499_v37  ;;  %v410_v44 = vsub.f32 0.0, %v332_v38  ;;  %v1156_v45 = vpop.f32.mrb[22].mxu0 }
 0x114   :  { %v1295_v46 = vpop.eup %1294  ;;  %1314 = vpow2.f32 %v460_v34  ;;  %v464_v47 = vmul.f32 1.442695, %v411_v41  ;;  %v347_v48 = vadd.f32 %v1156_v45, %v1604_v50  ;;  %v341_v49 = vpop.f32.mrb[23].mxu0 }
 0x115   :  { %v1297_v51 = vpop.eup %1296  ;;  %1316 = vrcp.f32 %v498_v43  ;;  %v462_v52 = vmul.f32 1.442695, %v410_v44  ;;  %1186 = vmatprep.mubr.msk.f32.mxu1 %vm593_vm1, %v1295_v46  ;;  %v342_v53 = vadd.f32 %v1604_v50, %v341_v49 }
 0x116   :  { %v1299_v54 = vpop.eup %1298  ;;  %1318 = vpow2.f32 %v458_v40  ;;  %v413_v55 = vsub.f32 0.0, %v347_v48  ;;  %1187 = vmatmul.mubr.msk.f32.gmra.mrb[6].mxu1 %vm593_vm1, %v1293_v42 }
 0x117   :  { %v1301_v56 = vpop.eup %1300  ;;  %v501_v57 = vadd.f32 1.0, %v1299_v54  ;;  %1320 = vpow2.f32 %v464_v47  ;;  %v412_v58 = vsub.f32 0.0, %v342_v53  ;;  %v1159_v59 = vpop.f32.mrb[24].mxu0 }
 0x118   :  { %v1303_v60 = vpop.eup %1302  ;;  %v500_v61 = vadd.f32 1.0, %v1301_v56  ;;  %1322 = vpow2.f32 %v462_v52  ;;  %v468_v62 = vmul.f32 1.442695, %v413_v55  ;;  %v357_v63 = vadd.f32 %v1159_v59, %v1604_v50  ;;  %v351_v0 = vpop.f32.mrb[25].mxu0 }
 0x119   :  { %v1305_v1 = vpop.eup %1304  ;;  %1324 = vrcp.f32 %v501_v57  ;;  %v466_v2 = vmul.f32 1.442695, %v412_v58  ;;  %1189 = vmatprep.mubr.msk.f32.mxu1 %vm593_vm1, %v1303_v60  ;;  %v352_v3 = vadd.f32 %v1604_v50, %v351_v0 }
 0x11a   :  { %v1307_v4 = vpop.eup %1306  ;;  %1326 = vrcp.f32 %v500_v61  ;;  %v415_v5 = vsub.f32 0.0, %v357_v63  ;;  %1190 = vmatmul.mubr.msk.f32.gmra.mrb[8].mxu1 %vm593_vm1, %v1297_v51 }
 0x11b   :  { %v1309_v6 = vpop.eup %1308  ;;  %v503_v7 = vadd.f32 1.0, %v1307_v4  ;;  %1328 = vpow2.f32 %v468_v62  ;;  %v414_v8 = vsub.f32 0.0, %v352_v3  ;;  %v1162_v9 = vpop.f32.mrb[26].mxu0 }
 0x11c   :  { %v1311_v10 = vpop.eup %1310  ;;  %v502_v11 = vadd.f32 1.0, %v1309_v6  ;;  %1330 = vpow2.f32 %v466_v2  ;;  %v472_v12 = vmul.f32 1.442695, %v415_v5  ;;  %v367_v13 = vadd.f32 %v1162_v9, %v1604_v50  ;;  %v361_v14 = vpop.f32.mrb[27].mxu0 }
 0x11d   :  { %v1313_v15 = vpop.eup %1312  ;;  %1332 = vrcp.f32 %v503_v7  ;;  %v470_v16 = vmul.f32 1.442695, %v414_v8  ;;  %1192 = vmatprep.mubr.msk.f32.mxu1 %vm593_vm1, %v1311_v10  ;;  %v362_v17 = vadd.f32 %v1604_v50, %v361_v14 }
 0x11e   :  { %v1315_v18 = vpop.eup %1314  ;;  %1334 = vrcp.f32 %v502_v11  ;;  %v417_v19 = vsub.f32 0.0, %v367_v13  ;;  %1193 = vmatmul.mubr.msk.f32.gmra.mrb[10].mxu1 %vm593_vm1, %v1305_v1 }
 0x11f   :  { %v1317_v20 = vpop.eup %1316  ;;  %1336 = vpow2.f32 %v472_v12  ;;  %v416_v21 = vsub.f32 0.0, %v362_v17  ;;  %v1165_v22 = vpop.f32.mrb[28].mxu0  ;;  %v505_v24 = vadd.f32 1.0, %v1315_v18 }
 0x120   :  { %v1319_v23 = vpop.eup %1318  ;;  %1338 = vpow2.f32 %v470_v16  ;;  %v476_v25 = vmul.f32 1.442695, %v417_v19  ;;  %v377_v26 = vadd.f32 %v1165_v22, %v1604_v50  ;;  %1195 = vmatprep.mubr.msk.f32.mxu1 %vm593_vm1, %v1317_v20  ;;  %v371_v27 = vpop.f32.mrb[29].mxu0 }
 0x121   :  { %v1321_v28 = vpop.eup %1320  ;;  %v504_v29 = vadd.f32 1.0, %v1319_v23  ;;  %v372_v30 = vadd.f32 %v1604_v50, %v371_v27  ;;  %v474_v32 = vmul.f32 1.442695, %v416_v21  ;;  %v1673_v21 = vld [vmem:[%s1723_s4] ss:$0 sm:$0xff]  ;;  %s1404_s4 = smov [#allocation2]  }
 0x122   :  { %v1323_v31 = vpop.eup %1322  ;;  %1340 = vpow2.f32 %v476_v25  ;;  %v419_v33 = vsub.f32 0.0, %v377_v26  ;;  %1196 = vmatmul.mubr.msk.f32.gmra.mrb[12].mxu1 %vm593_vm1, %v1313_v15  ;;  %v507_v39 = vadd.f32 1.0, %v1321_v28  ;;  %s952_s29 = sshll.u32 %s1404_s4, 4  ;;  %s953_s29 = int_to_ptr.vmem [resolvable:$true] %s952_s29 }
 0x123   :  { %v1325_v34 = vpop.eup %1324  ;;  %1342 = vrcp.f32 %v504_v29  ;;  %v506_v35 = vadd.f32 1.0, %v1323_v31  ;;  %v418_v36 = vsub.f32 0.0, %v372_v30  ;;  %v1168_v37 = vpop.f32.mrb[30].mxu0  ;;  %s1380_s30 = scalar_lea.vmem %s953_s29, 4096  ;;  %p1385_p1 = scmp.lt.s32.totalorder %s953_s29, %s953_s29 }
 0x124   :  { %v1327_v38 = vpop.eup %1326  ;;  %1344 = vrcp.f32 %v505_v24  ;;  %v480_v40 = vmul.f32 1.442695, %v419_v33  ;;  %v387_v41 = vadd.f32 %v1168_v37, %v1604_v50  ;;  %v381_v42 = vpop.f32.mrb[31].mxu0  ;;  %p1381_p0 = scmp.ne.s32.totalorder %s953_s29, %s1380_s30  ;;  %p1386_p2 = scmp.lt.s32.totalorder %s1380_s30, %s1380_s30 }
 0x125   :  { %v1329_v43 = vpop.eup %1328  ;;  %1346 = vrcp.f32 %v506_v35  ;;  %1198 = vmatprep.mubr.msk.f32.mxu1 %vm593_vm1, %v1327_v38  ;;  %v382_v44 = vadd.f32 %v1604_v50, %v381_v42  ;;  %v478_v46 = vmul.f32 1.442695, %v418_v36 }
 0x126   :  { %v1331_v45 = vpop.eup %1330  ;;  %1348 = vpow2.f32 %v474_v32  ;;  %v421_v47 = vsub.f32 0.0, %v387_v41  ;;  %1199 = vmatmul.mubr.msk.f32.gmra.mrb[14].mxu1 %vm593_vm1, %v1325_v34  ;;  %v509_v53 = vadd.f32 1.0, %v1329_v43  ;;  %p1387_p3 = por %p1386_p2, %p1385_p1 }
 0x127   :  { %v1333_v48 = vpop.eup %1332  ;;  %v508_v49 = vadd.f32 1.0, %v1331_v45  ;;  %1350 = vpow2.f32 %v480_v40  ;;  %v420_v51 = vsub.f32 0.0, %v382_v44 }
 0x128   :  { %v1335_v52 = vpop.eup %1334  ;;  %1352 = vrcp.f32 %v507_v39  ;;  %v484_v54 = vmul.f32 1.442695, %v421_v47  ;;  %p1388_p4 = pnand %p1387_p3, %p1381_p0 }
 0x129   :  { %v1337_v55 = vpop.eup %1336  ;;  %1354 = vrcp.f32 %v508_v49  ;;  %1201 = vmatprep.mubr.msk.f32.mxu1 %vm593_vm1, %v1335_v52  ;;  %v482_v50 = vmul.f32 1.442695, %v420_v51 }
 0x12a   :  { %v1339_v56 = vpop.eup %1338  ;;  %1356 = vpow2.f32 %v478_v46  ;;  %1202 = vmatmul.mubr.msk.f32.gmra.mrb[16].mxu1 %vm593_vm1, %v1333_v48  ;;  %v511_v59 = vadd.f32 1.0, %v1337_v55 }
 0x12b   :  { %v510_v57 = vadd.f32 1.0, %v1339_v56  ;;  %1358 = vpow2.f32 %v484_v54 }
 0x12c   :  { %v1341_v58 = vpop.eup %1340  ;;  %1360 = vrcp.f32 %v509_v53 }
 0x12d   :  { %v1343_v60 = vpop.eup %1342  ;;  %1362 = vrcp.f32 %v510_v57  ;;  %v513_v0 = vadd.f32 1.0, %v1341_v58 }
 0x12e   :  { %v1345_v61 = vpop.eup %1344  ;;  %1364 = vpow2.f32 %v482_v50  ;;  %1204 = vmatprep.mubr.msk.f32.mxu1 %vm593_vm1, %v1343_v60 }
 0x12f   :  { %v1347_v62 = vpop.eup %1346  ;;  %1205 = vmatmul.mubr.msk.f32.gmra.mrb[18].mxu1 %vm593_vm1, %v1345_v61  ;;  %1366 = vrcp.f32 %v511_v59 }
 0x130   :  { %v1349_v63 = vpop.eup %1348  ;;  %1207 = vmatprep.mubr.msk.f32.mxu1 %vm593_vm1, %v1347_v62 }
 0x131   :  { %v1351_v1 = vpop.eup %1350  ;;  %v512_v2 = vadd.f32 1.0, %v1349_v63 }
 0x132   :  { %v1353_v3 = vpop.eup %1352  ;;  %v515_v6 = vadd.f32 1.0, %v1351_v1 }
 0x133   :  { %v1355_v4 = vpop.eup %1354  ;;  %1368 = vrcp.f32 %v512_v2  ;;  %1208 = vmatmul.mubr.msk.f32.gmra.mrb[20].mxu1 %vm593_vm1, %v1353_v3 }
 0x134   :  { %v1357_v5 = vpop.eup %1356  ;;  %1370 = vrcp.f32 %v513_v0  ;;  %1210 = vmatprep.mubr.msk.f32.mxu1 %vm593_vm1, %v1355_v4 }
 0x135   :  { %v1359_v7 = vpop.eup %1358  ;;  %v514_v8 = vadd.f32 1.0, %v1357_v5 }
 0x136   :  { %v1361_v9 = vpop.eup %1360  ;;  %v517_v12 = vadd.f32 1.0, %v1359_v7 }
 0x137   :  { %v1363_v10 = vpop.eup %1362  ;;  %1372 = vrcp.f32 %v514_v8  ;;  %1211 = vmatmul.mubr.msk.f32.gmra.mrb[22].mxu1 %vm593_vm1, %v1361_v9 }
 0x138   :  { %v1365_v11 = vpop.eup %1364  ;;  %1374 = vrcp.f32 %v515_v6  ;;  %1213 = vmatprep.mubr.msk.f32.mxu1 %vm593_vm1, %v1363_v10 }
 0x139   :  { %v516_v13 = vadd.f32 1.0, %v1365_v11  ;;  %v1367_v14 = vpop.eup %1366 }
 0x13b   :  { %1376 = vrcp.f32 %v516_v13  ;;  %1214 = vmatmul.mubr.msk.f32.gmra.mrb[24].mxu1 %vm593_vm1, %v1367_v14 }
 0x13c   :  { %1378 = vrcp.f32 %v517_v12 }
 0x13d   :  { %v1369_v15 = vpop.eup %1368 }
 0x13e   :  { %v1371_v16 = vpop.eup %1370  ;;  %1216 = vmatprep.mubr.msk.f32.mxu1 %vm593_vm1, %v1369_v15 }
 0x13f   :  { %1217 = vmatmul.mubr.msk.f32.gmra.mrb[26].mxu1 %vm593_vm1, %v1371_v16 }
 0x141   :  { %v1373_v17 = vpop.eup %1372 }
 0x142   :  { %v1375_v18 = vpop.eup %1374  ;;  %1219 = vmatprep.mubr.msk.f32.mxu1 %vm593_vm1, %v1373_v17 }
 0x143   :  { %1220 = vmatmul.mubr.msk.f32.gmra.mrb[28].mxu1 %vm593_vm1, %v1375_v18 }
 0x145   :  { %v1377_v19 = vpop.eup %1376 }
 0x146   :  { %v1379_v20 = vpop.eup %1378  ;;  %1222 = vmatprep.mubr.msk.f32.mxu1 %vm593_vm1, %v1377_v19 }
 0x147   :  { %1223 = vmatmul.mubr.msk.f32.gmra.mrb[30].mxu1 %vm593_vm1, %v1379_v20 }
 0x1db   :  { %v1179_v22 = vpop.f32.mrb[0].mxu1 }
 0x1dc   :  { %v762_v23 = vadd.f32 %v1179_v22, %v1673_v21  ;;  %v756_v24 = vpop.f32.mrb[1].mxu1 }
 0x1dd   :  { %v757_v25 = vadd.f32 %v1673_v21, %v756_v24 }
 0x1de   :  { %916 = vst [vmem:[#allocation2 + $0x8] sm:$0xff] %v762_v23 }
 0x1df   :  { %915 = vst [vmem:[#allocation2] sm:$0xff] %v757_v25  ;;  %v1182_v26 = vpop.f32.mrb[2].mxu1 }
 0x1e0   :  { %v772_v27 = vadd.f32 %v1182_v26, %v1673_v21  ;;  %v766_v28 = vpop.f32.mrb[3].mxu1 }
 0x1e1   :  { %v767_v29 = vadd.f32 %v1673_v21, %v766_v28 }
 0x1e2   :  { %918 = vst [vmem:[#allocation2 + $0x18] sm:$0xff] %v772_v27 }
 0x1e3   :  { %917 = vst [vmem:[#allocation2 + $0x10] sm:$0xff] %v767_v29  ;;  %v1185_v30 = vpop.f32.mrb[4].mxu1 }
 0x1e4   :  { %v782_v31 = vadd.f32 %v1185_v30, %v1673_v21  ;;  %v776_v32 = vpop.f32.mrb[5].mxu1 }
 0x1e5   :  { %v777_v33 = vadd.f32 %v1673_v21, %v776_v32 }
 0x1e6   :  { %920 = vst [vmem:[#allocation2 + $0x28] sm:$0xff] %v782_v31 }
 0x1e7   :  { %919 = vst [vmem:[#allocation2 + $0x20] sm:$0xff] %v777_v33 }
 0x1e9   :  { %v1188_v34 = vpop.f32.mrb[6].mxu1 }
 0x1ea   :  { %v792_v35 = vadd.f32 %v1188_v34, %v1673_v21  ;;  %v786_v36 = vpop.f32.mrb[7].mxu1 }
 0x1eb   :  { %v787_v37 = vadd.f32 %v1673_v21, %v786_v36 }
 0x1ec   :  { %922 = vst [vmem:[#allocation2 + $0x38] sm:$0xff] %v792_v35 }
 0x1ed   :  { %921 = vst [vmem:[#allocation2 + $0x30] sm:$0xff] %v787_v37  ;;  %v1191_v38 = vpop.f32.mrb[8].mxu1 }
 0x1ee   :  { %v802_v39 = vadd.f32 %v1191_v38, %v1673_v21  ;;  %v796_v40 = vpop.f32.mrb[9].mxu1 }
 0x1ef   :  { %v797_v41 = vadd.f32 %v1673_v21, %v796_v40 }
 0x1f0   :  { %924 = vst [vmem:[#allocation2 + $0x48] sm:$0xff] %v802_v39 }
 0x1f1   :  { %923 = vst [vmem:[#allocation2 + $0x40] sm:$0xff] %v797_v41  ;;  %v1194_v42 = vpop.f32.mrb[10].mxu1 }
 0x1f2   :  { %v812_v43 = vadd.f32 %v1194_v42, %v1673_v21  ;;  %v806_v44 = vpop.f32.mrb[11].mxu1 }
 0x1f3   :  { %v807_v45 = vadd.f32 %v1673_v21, %v806_v44 }
 0x1f4   :  { %926 = vst [vmem:[#allocation2 + $0x58] sm:$0xff] %v812_v43 }
 0x1f5   :  { %925 = vst [vmem:[#allocation2 + $0x50] sm:$0xff] %v807_v45  ;;  %v1197_v46 = vpop.f32.mrb[12].mxu1 }
 0x1f6   :  { %v822_v47 = vadd.f32 %v1197_v46, %v1673_v21  ;;  %v816_v48 = vpop.f32.mrb[13].mxu1 }
 0x1f7   :  { %v817_v49 = vadd.f32 %v1673_v21, %v816_v48 }
 0x1f8   :  { %928 = vst [vmem:[#allocation2 + $0x68] sm:$0xff] %v822_v47 }
 0x1f9   :  { %927 = vst [vmem:[#allocation2 + $0x60] sm:$0xff] %v817_v49  ;;  %v1200_v51 = vpop.f32.mrb[14].mxu1 }
 0x1fa   :  { %v832_v52 = vadd.f32 %v1200_v51, %v1673_v21  ;;  %v826_v53 = vpop.f32.mrb[15].mxu1 }
 0x1fb   :  { %v827_v54 = vadd.f32 %v1673_v21, %v826_v53 }
 0x1fc   :  { %930 = vst [vmem:[#allocation2 + $0x78] sm:$0xff] %v832_v52 }
 0x1fd   :  { %929 = vst [vmem:[#allocation2 + $0x70] sm:$0xff] %v827_v54  ;;  %v1203_v55 = vpop.f32.mrb[16].mxu1 }
 0x1fe   :  { %v842_v56 = vadd.f32 %v1203_v55, %v1673_v21  ;;  %v836_v50 = vpop.f32.mrb[17].mxu1 }
 0x1ff   :  { %v837_v57 = vadd.f32 %v1673_v21, %v836_v50 }
 0x200   :  { %932 = vst [vmem:[#allocation2 + $0x88] sm:$0xff] %v842_v56 }
 0x201   :  { %931 = vst [vmem:[#allocation2 + $0x80] sm:$0xff] %v837_v57 }
 0x202   :  { %v1206_v58 = vpop.f32.mrb[18].mxu1 }
 0x203   :  { %v852_v59 = vadd.f32 %v1206_v58, %v1673_v21  ;;  %v846_v60 = vpop.f32.mrb[19].mxu1 }
 0x204   :  { %v847_v61 = vadd.f32 %v1673_v21, %v846_v60 }
 0x205   :  { %934 = vst [vmem:[#allocation2 + $0x98] sm:$0xff] %v852_v59 }
 0x206   :  { %933 = vst [vmem:[#allocation2 + $0x90] sm:$0xff] %v847_v61  ;;  %v1209_v62 = vpop.f32.mrb[20].mxu1 }
 0x207   :  { %v862_v63 = vadd.f32 %v1209_v62, %v1673_v21  ;;  %v856_v0 = vpop.f32.mrb[21].mxu1 }
 0x208   :  { %v857_v1 = vadd.f32 %v1673_v21, %v856_v0 }
 0x209   :  { %936 = vst [vmem:[#allocation2 + $0xa8] sm:$0xff] %v862_v63 }
 0x20a   :  { %935 = vst [vmem:[#allocation2 + $0xa0] sm:$0xff] %v857_v1  ;;  %v1212_v2 = vpop.f32.mrb[22].mxu1 }
 0x20b   :  { %v872_v3 = vadd.f32 %v1212_v2, %v1673_v21  ;;  %v866_v4 = vpop.f32.mrb[23].mxu1 }
 0x20c   :  { %v867_v5 = vadd.f32 %v1673_v21, %v866_v4 }
 0x20d   :  { %938 = vst [vmem:[#allocation2 + $0xb8] sm:$0xff] %v872_v3 }
 0x20e   :  { %937 = vst [vmem:[#allocation2 + $0xb0] sm:$0xff] %v867_v5  ;;  %v1215_v6 = vpop.f32.mrb[24].mxu1 }
 0x20f   :  { %v882_v7 = vadd.f32 %v1215_v6, %v1673_v21  ;;  %v876_v8 = vpop.f32.mrb[25].mxu1 }
 0x210   :  { %v877_v9 = vadd.f32 %v1673_v21, %v876_v8 }
 0x211   :  { %940 = vst [vmem:[#allocation2 + $0xc8] sm:$0xff] %v882_v7 }
 0x212   :  { %939 = vst [vmem:[#allocation2 + $0xc0] sm:$0xff] %v877_v9  ;;  %v1218_v10 = vpop.f32.mrb[26].mxu1 }
 0x213   :  { %v892_v11 = vadd.f32 %v1218_v10, %v1673_v21  ;;  %v886_v12 = vpop.f32.mrb[27].mxu1 }
 0x214   :  { %v887_v13 = vadd.f32 %v1673_v21, %v886_v12 }
 0x215   :  { %942 = vst [vmem:[#allocation2 + $0xd8] sm:$0xff] %v892_v11 }
 0x216   :  { %941 = vst [vmem:[#allocation2 + $0xd0] sm:$0xff] %v887_v13  ;;  %v1221_v14 = vpop.f32.mrb[28].mxu1 }
 0x217   :  { %v902_v15 = vadd.f32 %v1221_v14, %v1673_v21  ;;  %v896_v16 = vpop.f32.mrb[29].mxu1 }
 0x218   :  { %v897_v17 = vadd.f32 %v1673_v21, %v896_v16 }
 0x219   :  { %944 = vst [vmem:[#allocation2 + $0xe8] sm:$0xff] %v902_v15 }
 0x21a   :  { %943 = vst [vmem:[#allocation2 + $0xe0] sm:$0xff] %v897_v17  ;;  %v1224_v18 = vpop.f32.mrb[30].mxu1 }
 0x21b   :  { %v912_v19 = vadd.f32 %v1224_v18, %v1673_v21  ;;  %v906_v20 = vpop.f32.mrb[31].mxu1 }
 0x21c   :  { %v907_v22 = vadd.f32 %v1673_v21, %v906_v20 }
 0x21d   :  { %946 = vst [vmem:[#allocation2 + $0xf8] sm:$0xff] %v912_v19 }
 0x21e   :  { %945 = vst [vmem:[#allocation2 + $0xf0] sm:$0xff] %v907_v22 }
 0x21f   :  { %1391 = shalt.err (!%p1388_p4)
}
 0x220   :  { %s1392_s8 = scalar_lea.hbm %s1724_s5, 4096 }
 0x221   :  { %p1393_p5 = scmp.ne.s32.totalorder %s1724_s5, %s1392_s8  ;;  %p1396_p6 = scmp.lt.u32.totalorder %s1392_s8, %s1724_s5 }
 0x223   :  { %p1398_p7 = pnand %p1396_p6, %p1393_p5 }
 0x225   :  { %1401 = shalt.err (!%p1398_p7)
}
 0x226   :  { %s1405_s13 = smov 128   ;;  %s1406_s14 = smov 8  }
 0x227   :  { %958 = dma.vmem_to_hbm [thread:$0]  %s953_s29, 4096, %s1724_s5, [#allocation3], %s1405_s13, %s1405_s13, %s1406_s14  }
 0x228   :  { %1402 = dma.done.wait [#allocation3], 4096  }
 0x229   :  { %1403 = vsyncadd [#allocation3], 4294963200 }
 0x22a   :  { %962 = vsyncpa [#allocation3], 1 }

</bundles_post_ra>
